<compile_context>
chip_gen: v5e
topology: v5e:2x2
jax: 0.10.0
libtpu: 0.0.40
codegen_flags: <defaults>
</compile_context>

<pallas_src>
import jax
import jax.numpy as jnp
from jax import lax
from jax.experimental import pallas as pl
from jax.experimental.pallas import tpu as pltpu

SIZE = 3          # input features  (module default size=3)
MID = 50          # hidden features (module default mid=50)
MID2 = 10
OUT = 1
NEG_SLOPE = 0.01  # nn.LeakyReLU default


def _leaky_relu(x):
    # max(x, a*x) == LeakyReLU(x) exactly for 0 < a < 1: 2 VALU ops per vreg.
    return jnp.maximum(x, NEG_SLOPE * x)


def _round_up(n, m):
    return ((n + m - 1) // m) * m


def mlp_kernel(x_ref, w1_ref, b1_ref, w2_ref, b2_ref, w3_ref, b3_ref, o_ref):
    """One batch tile. x_ref: (TM, SIZE) row-major tile -> o_ref: (OUT, TM)."""
    x = x_ref[...]                                            # (TM, SIZE)

    # ---- Layer 1 on the MXU: h1 = w1 @ x^T + b1, shape (MID, TM) ----
    # dot_general contracts dim 1 of both operands (q @ k^T pattern), so the
    # tile transpose is absorbed into the matmul lowering.
    h1 = lax.dot_general(
        w1_ref[...], x,
        dimension_numbers=(((1,), (1,)), ((), ())),
        preferred_element_type=jnp.float32) + b1_ref[...]
    h1 = _leaky_relu(h1)                                      # (MID, TM)

    # ---- Layer 2 (10 x 50) on the MXU ----
    h2 = jnp.dot(w2_ref[...], h1,
                 preferred_element_type=jnp.float32) + b2_ref[...]
    h2 = _leaky_relu(h2)                                      # (MID2, TM)

    # ---- Layer 3 (1 x 10) on the MXU ----
    y = jnp.dot(w3_ref[...], h2,
                preferred_element_type=jnp.float32) + b3_ref[...]
    o_ref[...] = y.astype(o_ref.dtype)                        # (OUT, TM), lane-dense


def lucas_machine(x, params, *, tm_max=8192):
    """x: (B, SIZE) float32. params: PyTorch-layout weights (out,in), biases (out,)."""
    B = x.shape[0]
    assert x.shape[1] == SIZE, x.shape
    x = x.astype(jnp.float32)

    w1 = params["w1"].astype(jnp.float32)                     # (MID, SIZE)
    b1c = params["b1"].reshape(MID, 1).astype(jnp.float32)
    w2 = params["w2"].astype(jnp.float32)                     # (MID2, MID)
    b2c = params["b2"].reshape(MID2, 1).astype(jnp.float32)
    w3 = params["w3"].astype(jnp.float32)                     # (OUT, MID2)
    b3c = params["b3"].reshape(OUT, 1).astype(jnp.float32)

    # ---- Tile selection ----
    # Lane-aligned batch extent; the grid uses cdiv + a partial final block so
    # we never pad/copy the input in HBM (<=127 wasted rows of masked work).
    B128 = _round_up(max(B, 1), 128)
    n_steps = -(-B128 // tm_max)
    if B128 >= 2 * 128:
        n_steps = max(n_steps, 2)          # give v7x's 2nd TensorCore work
    tm = _round_up(-(-B128 // n_steps), 128)
    tm = min(tm, max(tm_max, 128))
    n_steps = -(-B128 // tm)
    grid = (n_steps,)

    # Per-tile VMEM budget (bytes): double-buffered (tm, 3) input tile
    # (lane-pads to 128), double-buffered (1, tm) output tile, plus the f32
    # intermediates (xT/h1/h2/y sublane-padded). ~12 MiB at tm=8192.
    vmem_need = tm * 4 * (2 * 128 + 2 * 8 + 96) + (2 << 20)
    vmem_limit = int(min(64 * 2**20, max(32 * 2**20, 2 * vmem_need)))

    def resident(shape):                   # weights/biases: constant block idx
        return pl.BlockSpec(shape, lambda i: (0, 0))

    out = pl.pallas_call(
        mlp_kernel,
        out_shape=jax.ShapeDtypeStruct((OUT, B), jnp.float32),
        grid=grid,
        in_specs=[
            pl.BlockSpec((tm, SIZE), lambda i: (i, 0)),       # x tile, streamed
            resident((MID, SIZE)),                            # w1  (50, 3)
            resident((MID, 1)),                               # b1  (50, 1)
            resident((MID2, MID)),                            # w2  (10, 50)
            resident((MID2, 1)),                              # b2  (10, 1)
            resident((OUT, MID2)),                            # w3  (1, 10)
            resident((OUT, 1)),                               # b3  (1, 1)
        ],
        out_specs=pl.BlockSpec((OUT, tm), lambda i: (0, i)),
        compiler_params=pltpu.CompilerParams(
            dimension_semantics=("parallel",),
            vmem_limit_bytes=vmem_limit),
    )(x, w1, b1c, w2, b2c, w3, b3c)

    return out.T                          # (B, OUT); transpose of a (1, B) is free


def init_params(key):
    """Deterministic init mimicking nn.Linear (uniform(-1/sqrt(fan_in), ...)),
    stored in PyTorch layout: weight (out, in), bias (out,)."""
    ks = jax.random.split(key, 6)

    def linear(kw, kb, fan_in, fan_out):
        bound = 1.0 / jnp.sqrt(jnp.float32(fan_in))
        w = jax.random.uniform(kw, (fan_out, fan_in), jnp.float32, -bound, bound)
        b = jax.random.uniform(kb, (fan_out,), jnp.float32, -bound, bound)
        return w, b

    w1, b1 = linear(ks[0], ks[1], SIZE, MID)
    w2, b2 = linear(ks[2], ks[3], MID, MID2)
    w3, b3 = linear(ks[4], ks[5], MID2, OUT)
    return dict(w1=w1, b1=b1, w2=w2, b2=b2, w3=w3, b3=b3)


def reference(x, p):
    h = _leaky_relu(x @ p["w1"].T + p["b1"])
    h = _leaky_relu(h @ p["w2"].T + p["b2"])
    return h @ p["w3"].T + p["b3"]


if __name__ == "__main__":
    key = jax.random.PRNGKey(0)
    pkey, xkey1, xkey2 = jax.random.split(key, 3)
    params = init_params(pkey)

    # Small shape consistent with the module: batch=8, features=3.
    x_small = jax.random.normal(xkey1, (8, SIZE), jnp.float32)
    out_small = jax.block_until_ready(lucas_machine(x_small, params))
    ref_small = reference(x_small, params)
    assert out_small.shape == (8, OUT), out_small.shape
    assert jnp.allclose(out_small, ref_small, atol=1e-5, rtol=1e-5), \
        float(jnp.max(jnp.abs(out_small - ref_small)))

    # Exercise multiple grid steps + the partial final tile (B not a multiple
    # of 128 and not a multiple of the tile).
    x_big = jax.random.normal(xkey2, (1000, SIZE), jnp.float32)
    out_big = jax.block_until_ready(lucas_machine(x_big, params))
    ref_big = reference(x_big, params)
    assert out_big.shape == (1000, OUT), out_big.shape
    assert jnp.allclose(out_big, ref_big, atol=1e-5, rtol=1e-5), \
        float(jnp.max(jnp.abs(out_big - ref_big)))

    print("KERNEL_OK")
</pallas_src>

<mosaic_0001>
module attributes {stable_mosaic.version = 11 : i64} {
  func.func @mlp_kernel(%arg0: i32, %arg1: memref<128x3xf32, #tpu.memory_space<vmem>>, %arg2: memref<50x3xf32, #tpu.memory_space<vmem>>, %arg3: memref<50x1xf32, #tpu.memory_space<vmem>>, %arg4: memref<10x50xf32, #tpu.memory_space<vmem>>, %arg5: memref<10x1xf32, #tpu.memory_space<vmem>>, %arg6: memref<1x10xf32, #tpu.memory_space<vmem>>, %arg7: memref<1x1xf32, #tpu.memory_space<vmem>>, %arg8: memref<1x128xf32, #tpu.memory_space<vmem>>) attributes {dimension_semantics = [#tpu.dimension_semantics<parallel>], iteration_bounds = array<i64: 1>, scalar_prefetch = 0 : i64, scratch_operands = 0 : i64, tpu.core_type = #tpu.core_type<tc>, window_params = [{transform_indices = @transform_0, window_bounds = array<i64: 128, 3>}, {pipeline_mode = #tpu.pipeline_mode<synchronous>, transform_indices = @transform_1, window_bounds = array<i64: 50, 3>}, {pipeline_mode = #tpu.pipeline_mode<synchronous>, transform_indices = @transform_2, window_bounds = array<i64: 50, 1>}, {pipeline_mode = #tpu.pipeline_mode<synchronous>, transform_indices = @transform_3, window_bounds = array<i64: 10, 50>}, {pipeline_mode = #tpu.pipeline_mode<synchronous>, transform_indices = @transform_4, window_bounds = array<i64: 10, 1>}, {pipeline_mode = #tpu.pipeline_mode<synchronous>, transform_indices = @transform_5, window_bounds = array<i64: 1, 10>}, {pipeline_mode = #tpu.pipeline_mode<synchronous>, transform_indices = @transform_6, window_bounds = array<i64: 1, 1>}, {transform_indices = @transform_7, window_bounds = array<i64: 1, 128>}]} {
    %c0 = arith.constant 0 : index
    %c0_0 = arith.constant 0 : index
    %0 = vector.load %arg1[%c0, %c0_0] : memref<128x3xf32, #tpu.memory_space<vmem>>, vector<128x3xf32>
    %c0_1 = arith.constant 0 : index
    %c0_2 = arith.constant 0 : index
    %1 = vector.load %arg2[%c0_1, %c0_2] : memref<50x3xf32, #tpu.memory_space<vmem>>, vector<50x3xf32>
    %cst = arith.constant dense<0.000000e+00> : vector<50x128xf32>
    %2 = tpu.matmul %1, %0, %cst {dimension_numbers = #tpu.dot_dimension_numbers<[1], [1], [0], [0], [0, 0, 1, 0], [], []>} : vector<50x3xf32>, vector<128x3xf32>, vector<50x128xf32> -> vector<50x128xf32>
    %c0_3 = arith.constant 0 : index
    %c0_4 = arith.constant 0 : index
    %3 = vector.load %arg3[%c0_3, %c0_4] : memref<50x1xf32, #tpu.memory_space<vmem>>, vector<50x1xf32>
    %4 = vector.broadcast %3 : vector<50x1xf32> to vector<50x128xf32>
    %5 = arith.addf %2, %4 : vector<50x128xf32>
    %cst_5 = arith.constant 0.00999999977 : f32
    %6 = vector.broadcast %cst_5 : f32 to vector<50x128xf32>
    %7 = arith.mulf %6, %5 : vector<50x128xf32>
    %8 = arith.maximumf %5, %7 : vector<50x128xf32>
    %c0_6 = arith.constant 0 : index
    %c0_7 = arith.constant 0 : index
    %9 = vector.load %arg4[%c0_6, %c0_7] : memref<10x50xf32, #tpu.memory_space<vmem>>, vector<10x50xf32>
    %cst_8 = arith.constant dense<0.000000e+00> : vector<10x128xf32>
    %10 = tpu.matmul %9, %8, %cst_8 {dimension_numbers = #tpu.dot_dimension_numbers<[1], [0], [0], [1], [0, 0, 1, 1], [], []>} : vector<10x50xf32>, vector<50x128xf32>, vector<10x128xf32> -> vector<10x128xf32>
    %c0_9 = arith.constant 0 : index
    %c0_10 = arith.constant 0 : index
    %11 = vector.load %arg5[%c0_9, %c0_10] : memref<10x1xf32, #tpu.memory_space<vmem>>, vector<10x1xf32>
    %12 = vector.broadcast %11 : vector<10x1xf32> to vector<10x128xf32>
    %13 = arith.addf %10, %12 : vector<10x128xf32>
    %cst_11 = arith.constant 0.00999999977 : f32
    %14 = vector.broadcast %cst_11 : f32 to vector<10x128xf32>
    %15 = arith.mulf %14, %13 : vector<10x128xf32>
    %16 = arith.maximumf %13, %15 : vector<10x128xf32>
    %c0_12 = arith.constant 0 : index
    %c0_13 = arith.constant 0 : index
    %17 = vector.load %arg6[%c0_12, %c0_13] : memref<1x10xf32, #tpu.memory_space<vmem>>, vector<1x10xf32>
    %cst_14 = arith.constant dense<0.000000e+00> : vector<1x128xf32>
    %18 = tpu.matmul %17, %16, %cst_14 {dimension_numbers = #tpu.dot_dimension_numbers<[1], [0], [0], [1], [0, 0, 1, 1], [], []>} : vector<1x10xf32>, vector<10x128xf32>, vector<1x128xf32> -> vector<1x128xf32>
    %c0_15 = arith.constant 0 : index
    %c0_16 = arith.constant 0 : index
    %19 = vector.load %arg7[%c0_15, %c0_16] : memref<1x1xf32, #tpu.memory_space<vmem>>, vector<1x1xf32>
    %20 = vector.broadcast %19 : vector<1x1xf32> to vector<1x128xf32>
    %21 = arith.addf %18, %20 : vector<1x128xf32>
    %c0_17 = arith.constant 0 : index
    %c0_18 = arith.constant 0 : index
    %22 = vector.load %arg8[%c0_17, %c0_18] : memref<1x128xf32, #tpu.memory_space<vmem>>, vector<1x128xf32>
    tpu.vector_store %arg8[%c0_17, %c0_18], %21 {strides = array<i32>} : memref<1x128xf32, #tpu.memory_space<vmem>>, vector<1x128xf32>,
    return
  }
  func.func @transform_0(%arg0: i32) -> (i32, i32) {
    %c0_i32 = arith.constant 0 : i32
    %c0_i32_0 = arith.constant 0 : i32
    return %arg0, %c0_i32 : i32, i32
  }
  func.func @transform_1(%arg0: i32) -> (i32, i32) {
    %c0_i32 = arith.constant 0 : i32
    %c0_i32_0 = arith.constant 0 : i32
    %c0_i32_1 = arith.constant 0 : i32
    return %c0_i32, %c0_i32_0 : i32, i32
  }
  func.func @transform_2(%arg0: i32) -> (i32, i32) {
    %c0_i32 = arith.constant 0 : i32
    %c0_i32_0 = arith.constant 0 : i32
    %c0_i32_1 = arith.constant 0 : i32
    return %c0_i32, %c0_i32_0 : i32, i32
  }
  func.func @transform_3(%arg0: i32) -> (i32, i32) {
    %c0_i32 = arith.constant 0 : i32
    %c0_i32_0 = arith.constant 0 : i32
    %c0_i32_1 = arith.constant 0 : i32
    return %c0_i32, %c0_i32_0 : i32, i32
  }
  func.func @transform_4(%arg0: i32) -> (i32, i32) {
    %c0_i32 = arith.constant 0 : i32
    %c0_i32_0 = arith.constant 0 : i32
    %c0_i32_1 = arith.constant 0 : i32
    return %c0_i32, %c0_i32_0 : i32, i32
  }
  func.func @transform_5(%arg0: i32) -> (i32, i32) {
    %c0_i32 = arith.constant 0 : i32
    %c0_i32_0 = arith.constant 0 : i32
    %c0_i32_1 = arith.constant 0 : i32
    return %c0_i32, %c0_i32_0 : i32, i32
  }
  func.func @transform_6(%arg0: i32) -> (i32, i32) {
    %c0_i32 = arith.constant 0 : i32
    %c0_i32_0 = arith.constant 0 : i32
    %c0_i32_1 = arith.constant 0 : i32
    return %c0_i32, %c0_i32_0 : i32, i32
  }
  func.func @transform_7(%arg0: i32) -> (i32, i32) {
    %c0_i32 = arith.constant 0 : i32
    %c0_i32_0 = arith.constant 0 : i32
    return %c0_i32, %arg0 : i32, i32
  }
}

</mosaic_0001>

<bundles_post_ra>
// kernel: tpu_custom_call.1
= control target key start
LH: loop header
LB: loop body
LE: loop exit
PB: predicated region body
PF: predicated region fallthrough
CT: control target
= control target key end

     0   :  { %s589_s0 = inlined_call_operand.vmem [shape: f32[8,3], index: 0, kind: input, shape index: {}]   ;;  %s590_s1 = inlined_call_operand.vmem [shape: f32[50,3], index: 1, kind: input, shape index: {}]   ;;  %s591_s2 = inlined_call_operand.vmem [shape: f32[50,1], index: 2, kind: input, shape index: {}]   ;;  %s592_s3 = inlined_call_operand.vmem [shape: f32[10,50], index: 3, kind: input, shape index: {}]   ;;  %s593_s4 = inlined_call_operand.vmem [shape: f32[10,1], index: 4, kind: input, shape index: {}]   ;;  %s594_s5 = inlined_call_operand.vmem [shape: f32[1,10], index: 5, kind: input, shape index: {}]   ;;  %s595_s6 = inlined_call_operand.<no memory space> [shape: f32[1,1], index: 6, kind: input, shape index: {}]   ;;  %s596_s7 = inlined_call_operand.hbm [shape: f32[1,8], index: 7, kind: output, shape index: {}]  }
   0x1   :  { %v12_v0 = vstv %s595_s6 }
   0x2   :  { %13 = vst [vmem:[#allocation2] sm:$0x1] %v12_v0 }
   0x3   :  { %v44_v1 = vld [vmem:[%s589_s0 + $0x78] sm:$0xff]  ;;  %vm94_vm0 = vcmask 23552   ;;  %v43_v2 = vld [vmem:[%s589_s0 + $0x70] sm:$0xff] }
   0x4   :  { %348 = vmatpush.xpose.msk.msra.mxu3 %vm94_vm0, %v44_v1  ;;  %320 = vmatpush.xpose.msk.msra.mxu0 %vm94_vm0, %v44_v1 }
   0x5   :  { %14 = vsyncpa [#allocation4], 0  ;;  %v42_v3 = vld [vmem:[%s589_s0 + $0x68] sm:$0xff]  ;;  %v41_v4 = vld [vmem:[%s589_s0 + $0x60] sm:$0xff]  ;;  %v395_v15 = vmov 0   ;;  %vm237_vm1 = vcmask 1041408  }
   0x6   :  { %v40_v5 = vld [vmem:[%s589_s0 + $0x58] sm:$0xff]  ;;  %v39_v6 = vld [vmem:[%s589_s0 + $0x50] sm:$0xff]  ;;  %v38_v7 = vld [vmem:[%s589_s0 + $0x48] sm:$0xff]  ;;  %367 = vset.pattern.permute.xlu1 %v395_v15  ;;  %366 = vset.pattern.permute.xlu0 %v395_v15  ;;  %vm230_vm2 = vcmask 408576   ;;  %vm276_vm3 = vcmask 80896   ;;  %s311_s22 = sshll.u32 %s596_s7, 4  ;;  %s312_s22 = int_to_ptr.hbm [resolvable:$true] %s311_s22 }
   0x7   :  { %v37_v8 = vld [vmem:[%s589_s0 + $0x40] sm:$0xff]  ;;  %v36_v9 = vld [vmem:[%s589_s0 + $0x38] sm:$0xff]  ;;  %v35_v10 = vld [vmem:[%s589_s0 + $0x30] sm:$0xff]  ;;  %368 = vset.pattern.permute.xlu2 %v395_v15 }
   0x8   :  { %349 = vmatpush.xpose.msk.msra.mxu3 %vm94_vm0, %v43_v2  ;;  %321 = vmatpush.xpose.msk.msra.mxu0 %vm94_vm0, %v43_v2  ;;  %v34_v11 = vld [vmem:[%s589_s0 + $0x28] sm:$0xff]  ;;  %v33_v12 = vld [vmem:[%s589_s0 + $0x20] sm:$0xff]  ;;  %v32_v13 = vld [vmem:[%s589_s0 + $0x18] sm:$0xff] }
   0x9   :  { %v31_v14 = vld [vmem:[%s589_s0 + $0x10] sm:$0xff]  ;;  %v30_v16 = vld [vmem:[%s589_s0 + $0x8] sm:$0xff]  ;;  %v56_v17 = vld [vmem:[%s591_s2 + $0x20] sm:$0xff] }
   0xa   :  { %v58_v18 = vld [vmem:[%s591_s2 + $0x30] sm:$0x3]  ;;  %81 = vperm.xlu1 %367, %v56_v17   ;;  %v29_v19 = vld [vmem:[%s589_s0] sm:$0xff]  ;;  %v46_v20 = vld [vmem:[%s590_s1 + $0x8] sm:$0xff] }
   0xb   :  { %91 = vperm.xlu0 %366, %v58_v18   ;;  %v55_v21 = vld [vmem:[%s591_s2 + $0x18] sm:$0xff]  ;;  %v54_v22 = vld [vmem:[%s591_s2 + $0x10] sm:$0xff]  ;;  %v57_v23 = vld [vmem:[%s591_s2 + $0x28] sm:$0xff] }
   0xc   :  { %350 = vmatpush.xpose.msk.msra.mxu3 %vm94_vm0, %v42_v3  ;;  %322 = vmatpush.xpose.msk.msra.mxu0 %vm94_vm0, %v42_v3  ;;  %v45_v24 = vld [vmem:[%s590_s1] sm:$0xff]  ;;  %v47_v25 = vld [vmem:[%s590_s1 + $0x10] sm:$0xff]  ;;  %v53_v26 = vld [vmem:[%s591_s2 + $0x8] sm:$0xff] }
   0xd   :  { %71 = vperm.xlu2 %368, %v54_v22   ;;  %v52_v27 = vld [vmem:[%s591_s2] sm:$0xff]  ;;  %v219_v28 = vld [vmem:[%s593_s4 + $0x8] sm:$0x3]  ;;  %v48_v29 = vld [vmem:[%s590_s1 + $0x18] sm:$0xff] }
   0xe   :  { %v218_v30 = vld [vmem:[%s593_s4] sm:$0xff]  ;;  %v50_v33 = vld [vmem:[%s590_s1 + $0x28] sm:$0xff]  ;;  %v51_v34 = vld [vmem:[%s590_s1 + $0x30] sm:$0x3] }
   0xf   :  { %v269_v31 = vld [vmem:[#allocation2] sm:$0x1] }
  0x10   :  { %351 = vmatpush.xpose.msk.msra.mxu3 %vm94_vm0, %v41_v4  ;;  %323 = vmatpush.xpose.msk.msra.mxu0 %vm94_vm0, %v41_v4  ;;  %v49_v32 = vld [vmem:[%s590_s1 + $0x20] sm:$0xff] }
  0x11   :  { %v268_v18 = vld [vmem:[%s594_s5] sm:$0x1] }
  0x12   :  { %76 = vperm.xlu1 %367, %v55_v21  }
  0x13   :  { %86 = vperm.xlu0 %366, %v57_v23  }
  0x14   :  { %352 = vmatpush.xpose.msk.msra.mxu3 %vm94_vm0, %v40_v5  ;;  %324 = vmatpush.xpose.msk.msra.mxu0 %vm94_vm0, %v40_v5 }
  0x15   :  { %66 = vperm.xlu2 %368, %v53_v26  }
  0x18   :  { %353 = vmatpush.xpose.msk.msra.mxu3 %vm94_vm0, %v39_v6  ;;  %325 = vmatpush.xpose.msk.msra.mxu0 %vm94_vm0, %v39_v6  ;;  %v216_v6 = vld [vmem:[%s592_s3] sm:$0xff] }
  0x1a   :  { %227 = vperm.xlu1 %367, %v219_v28  }
  0x1b   :  { %61 = vperm.xlu0 %366, %v52_v27  }
  0x1c   :  { %354 = vmatpush.xpose.msk.msra.mxu3 %vm94_vm0, %v38_v7  ;;  %326 = vmatpush.xpose.msk.msra.mxu0 %vm94_vm0, %v38_v7  ;;  %v217_v7 = vld [vmem:[%s592_s3 + $0x8] sm:$0x3]  ;;  %s396_s3 = smov [#allocation3]  }
  0x1d   :  { %222 = vperm.xlu2 %368, %v218_v30   ;;  %s309_s0 = sshll.u32 %s396_s3, 4  ;;  %s310_s0 = int_to_ptr.vmem [resolvable:$true] %s309_s0 }
  0x20   :  { %355 = vmatpush.xpose.msk.msra.mxu3 %vm94_vm0, %v37_v8  ;;  %327 = vmatpush.xpose.msk.msra.mxu0 %vm94_vm0, %v37_v8 }
  0x23   :  { %272 = vperm.xlu0 %366, %v269_v31  }
  0x24   :  { %356 = vmatpush.xpose.msk.msra.mxu3 %vm94_vm0, %v36_v9  ;;  %328 = vmatpush.xpose.msk.msra.mxu0 %vm94_vm0, %v36_v9 }
  0x28   :  { %357 = vmatpush.xpose.msk.msra.mxu3 %vm94_vm0, %v35_v10  ;;  %329 = vmatpush.xpose.msk.msra.mxu0 %vm94_vm0, %v35_v10 }
  0x2c   :  { %358 = vmatpush.xpose.msk.msra.mxu3 %vm94_vm0, %v34_v11  ;;  %330 = vmatpush.xpose.msk.msra.mxu0 %vm94_vm0, %v34_v11 }
  0x30   :  { %359 = vmatpush.xpose.msk.msra.mxu3 %vm94_vm0, %v33_v12  ;;  %331 = vmatpush.xpose.msk.msra.mxu0 %vm94_vm0, %v33_v12 }
  0x34   :  { %360 = vmatpush.xpose.msk.msra.mxu3 %vm94_vm0, %v32_v13  ;;  %332 = vmatpush.xpose.msk.msra.mxu0 %vm94_vm0, %v32_v13 }
  0x38   :  { %361 = vmatpush.xpose.msk.msra.mxu3 %vm94_vm0, %v31_v14  ;;  %333 = vmatpush.xpose.msk.msra.mxu0 %vm94_vm0, %v31_v14 }
  0x3c   :  { %362 = vmatpush.xpose.msk.msra.mxu3 %vm94_vm0, %v30_v16  ;;  %334 = vmatpush.xpose.msk.msra.mxu0 %vm94_vm0, %v30_v16 }
  0x40   :  { %363 = vmatpush.xpose.msk.msra.mxu3 %vm94_vm0, %v29_v19  ;;  %335 = vmatpush.xpose.msk.msra.mxu0 %vm94_vm0, %v29_v19 }
  0x43   :  { %337 = vmatmul.msk.f32.vlgmr.msra.gmra.mxu3 %vm94_vm0, %v46_v20  ;;  %336 = vmatmul.msk.f32.vlgmr.msra.gmra.mxu0 %vm94_vm0, %v45_v24 }
  0x4b   :  { %338 = vmatmul.msk.f32.gmra.mxu3 %vm94_vm0, %v47_v25 }
  0x53   :  { %339 = vmatmul.msk.f32.gmra.mxu3 %vm94_vm0, %v48_v29 }
  0x5b   :  { %340 = vmatmul.msk.f32.gmra.mxu3 %vm94_vm0, %v49_v32 }
  0x63   :  { %341 = vmatmul.msk.f32.gmra.mxu3 %vm94_vm0, %v50_v33 }
  0x67   :  { %v72_v42 = vpop.permute.xlu2 %71 }
  0x6b   :  { %342 = vmatmul.msk.f32.gmra.mxu3 %vm94_vm0, %v51_v34 }
  0x6f   :  { %v67_v52 = vpop.permute.xlu2 %66 }
  0x77   :  { %v223_v9 = vpop.permute.xlu2 %222 }
  0x7c   :  { %v82_v40 = vpop.permute.xlu1 %81 }
  0x7d   :  { %v92_v39 = vpop.permute.xlu0 %91 }
  0x84   :  { %v77_v45 = vpop.permute.xlu1 %76 }
  0x85   :  { %v87_v43 = vpop.permute.xlu0 %86 }
  0x8c   :  { %v228_v11 = vpop.permute.xlu1 %227 }
  0x8d   :  { %v62_v60 = vpop.permute.xlu0 %61 }
  0x95   :  { %v273_v19 = vpop.permute.xlu0 %272 }
  0x96   :  { %v275_v20 = vperm.slane %v273_v19, 0 }
  0xc0   :  { %v181_v56 = vpop.f32.mrf.mxu0 }
  0xc1   :  { %v182_v62 = vadd.f32 %v181_v56, %v62_v60 }
  0xc3   :  { %v202_v2 = vmul.f32 0.01, %v182_v62 }
  0xc5   :  { %v209_v5 = vmax.f32 %v182_v62, %v202_v2 }
  0xc6   :  { %v184_v35 = vpop.f32.mrf.mxu3 }
  0xc7   :  { %v185_v57 = vadd.f32 %v184_v35, %v67_v52 }
  0xc9   :  { %v203_v0 = vmul.f32 0.01, %v185_v57 }
  0xcb   :  { %v210_v4 = vmax.f32 %v185_v57, %v203_v0 }
  0xce   :  { %v187_v36 = vpop.f32.mrf.mxu3 }
  0xcf   :  { %v188_v53 = vadd.f32 %v187_v36, %v72_v42 }
  0xd1   :  { %v204_v61 = vmul.f32 0.01, %v188_v53 }
  0xd3   :  { %v211_v3 = vmax.f32 %v188_v53, %v204_v61 }
  0xd6   :  { %v190_v37 = vpop.f32.mrf.mxu3 }
  0xd7   :  { %v191_v49 = vadd.f32 %v190_v37, %v77_v45 }
  0xd9   :  { %v205_v58 = vmul.f32 0.01, %v191_v49 }
  0xdb   :  { %v212_v1 = vmax.f32 %v191_v49, %v205_v58 }
  0xde   :  { %v193_v38 = vpop.f32.mrf.mxu3 }
  0xdf   :  { %v194_v47 = vadd.f32 %v193_v38, %v82_v40 }
  0xe1   :  { %v206_v54 = vmul.f32 0.01, %v194_v47 }
  0xe3   :  { %v213_v63 = vmax.f32 %v194_v47, %v206_v54 }
  0xe6   :  { %v196_v41 = vpop.f32.mrf.mxu3 }
  0xe7   :  { %v197_v44 = vadd.f32 %v196_v41, %v87_v43 }
  0xe9   :  { %v207_v50 = vmul.f32 0.01, %v197_v44 }
  0xeb   :  { %v214_v59 = vmax.f32 %v197_v44, %v207_v50 }
  0xee   :  { %v199_v46 = vpop.f32.mrf.mxu3 }
  0xef   :  { %v200_v48 = vadd.f32 %v199_v46, %v92_v39 }
  0xf1   :  { %v208_v51 = vmul.f32 0.01, %v200_v48 }
  0xf3   :  { %v215_v55 = vmax.f32 %v200_v48, %v208_v51 }
  0xf5   :  { %343 = vmatpush.msk.msra.mxu1 %vm237_vm1, %v215_v55 }
  0xf7   :  { %251 = vmatpush.msra.mxu1 %v214_v59 }
  0xf9   :  { %252 = vmatpush.msra.mxu1 %v213_v63 }
  0xfb   :  { %253 = vmatpush.msra.mxu1 %v212_v1 }
  0xfd   :  { %254 = vmatpush.msra.mxu1 %v211_v3 }
  0xff   :  { %255 = vmatpush.msra.mxu1 %v210_v4 }
 0x101   :  { %256 = vmatpush.msra.mxu1 %v209_v5 }
 0x102   :  { %344 = vmatmul.msk.f32.vlgmr.msra.gmra.mxu1 %vm230_vm2, %v216_v6 }
 0x10a   :  { %345 = vmatmul.msk.f32.gmra.mxu1 %vm230_vm2, %v217_v7 }
 0x17f   :  { %v258_v8 = vpop.f32.mrf.mxu1 }
 0x180   :  { %v259_v10 = vadd.f32 %v258_v8, %v223_v9 }
 0x182   :  { %v264_v14 = vmul.f32 0.01, %v259_v10 }
 0x184   :  { %v266_v17 = vmax.f32 %v259_v10, %v264_v14 }
 0x187   :  { %v261_v12 = vpop.f32.mrf.mxu1 }
 0x188   :  { %v262_v13 = vadd.f32 %v261_v12, %v228_v11 }
 0x18a   :  { %v265_v15 = vmul.f32 0.01, %v262_v13 }
 0x18c   :  { %v267_v16 = vmax.f32 %v262_v13, %v265_v15 }
 0x18e   :  { %346 = vmatpush.msk.msra.mxu2 %vm237_vm1, %v267_v16 }
 0x190   :  { %298 = vmatpush.msra.mxu2 %v266_v17 }
 0x191   :  { %347 = vmatmul.msk.f32.vlgmr.msra.gmra.mxu2 %vm276_vm3, %v268_v18 }
 0x214   :  { %v300_v21 = vpop.f32.mrf.mxu2 }
 0x215   :  { %v301_v22 = vadd.f32 %v300_v21, %v275_v20 }
 0x217   :  { %303 = vst [vmem:[#allocation3] sm:$0x1] %v301_v22 }
 0x218   :  { %314 = dma.vmem_to_hbm [thread:$0]  %s310_s0, 16, %s312_s22, [#allocation4]  }
 0x219   :  { %393 = dma.done.wait [#allocation4], 16  }
 0x21a   :  { %394 = vsyncadd [#allocation4], 4294967280 }
 0x21b   :  { %319 = vsyncpa [#allocation4], 1 }

</bundles_post_ra>
